<compile_context>
chip_gen: v7x
topology: tpu7x:2x2x1
jax: 0.10.0
libtpu: 0.0.40
codegen_flags: <defaults>
</compile_context>

<pallas_src>
import math
import functools
import numpy as np

import jax
import jax.numpy as jnp
from jax import lax
from jax.experimental import pallas as pl
from jax.experimental.pallas import tpu as pltpu


def _round_up(x, m):
    return ((x + m - 1) // m) * m


def _choose_tile(dim, unit, cap=512):
    """Returns (tile, padded_dim) with tile % unit == 0 and tile | padded_dim."""
    d = _round_up(dim, unit)
    if d <= cap:
        return d, d
    return cap, _round_up(dim, cap)


# --------------------------------------------------------------------------
# Tiled matmul + bias + activation (Pallas).  Weights are pre-transposed,
# pre-padded and stored in bf16 by pack_linear(); activations are cast to bf16
# inside the kernel; accumulation is f32 in VMEM scratch.
# --------------------------------------------------------------------------

def _matmul_kernel(x_ref, w_ref, b_ref, o_ref, acc_ref, *, act, nk):
    @pl.when(pl.program_id(2) == 0)
    def _init():
        acc_ref[...] = jnp.zeros_like(acc_ref)

    acc_ref[...] += jnp.dot(x_ref[...].astype(jnp.bfloat16), w_ref[...],
                            preferred_element_type=jnp.float32)

    @pl.when(pl.program_id(2) == nk - 1)
    def _fin():
        y = acc_ref[...] + b_ref[...]
        if act == "relu":
            y = jnp.maximum(y, 0.0)
        elif act == "gelu":   # exact (erf) GELU, matching torch.nn.GELU default
            y = 0.5 * y * (1.0 + lax.erf(y * (1.0 / math.sqrt(2.0))))
        o_ref[...] = y


def pack_linear(w_t_f32, b_f32):
    """w_t: (K, N) f32 weight already transposed from torch (N, K); b: (N,).
    Pre-pads K/N to tiling-friendly multiples and casts the weight to bf16."""
    K, N = w_t_f32.shape
    _, Kp = _choose_tile(K, 128)
    _, Np = _choose_tile(N, 128)
    w = w_t_f32
    if Kp != K or Np != N:
        w = jnp.pad(w, ((0, Kp - K), (0, Np - N)))
    b = b_f32
    if Np != N:
        b = jnp.pad(b, (0, Np - N))
    return {"w": w.astype(jnp.bfloat16),
            "b": b.astype(jnp.float32).reshape(1, Np),
            "n": N}


def linear(x, lp, act="none"):
    """y = x @ W + b (+activation).  x:(M,K) f32, lp from pack_linear -> (M,N)."""
    w, b, N = lp["w"], lp["b"], lp["n"]
    M, K = x.shape
    Kp, Np = w.shape
    tm, Mp = _choose_tile(M, 8)
    tn = min(512, Np)
    tk = min(512, Kp)
    xp = x
    if Mp != M or Kp != K:
        xp = jnp.pad(x, ((0, Mp - M), (0, Kp - K)))
    nk = Kp // tk
    out = pl.pallas_call(
        functools.partial(_matmul_kernel, act=act, nk=nk),
        out_shape=jax.ShapeDtypeStruct((Mp, Np), jnp.float32),
        grid=(Mp // tm, Np // tn, nk),
        in_specs=[pl.BlockSpec((tm, tk), lambda i, j, k: (i, k)),
                  pl.BlockSpec((tk, tn), lambda i, j, k: (k, j)),
                  pl.BlockSpec((1, tn), lambda i, j, k: (0, j))],
        out_specs=pl.BlockSpec((tm, tn), lambda i, j, k: (i, j)),
        scratch_shapes=[pltpu.VMEM((tm, tn), jnp.float32)],
        compiler_params=pltpu.CompilerParams(
            dimension_semantics=("parallel", "parallel", "arbitrary"),
            vmem_limit_bytes=32 * 1024 * 1024),
    )(xp, w, b)
    if Mp != M or Np != N:
        out = out[:M, :N]
    return out


def linear3d(x, lp, act="none"):
    B, T, K = x.shape
    return linear(x.reshape(B * T, K), lp, act).reshape(B, T, -1)


# --------------------------------------------------------------------------
# Fused (residual-add +) LayerNorm (+ residual-add), row-tiled
# --------------------------------------------------------------------------

def _ln_kernel(*refs, n_sum, has_post):
    out_ref = refs[-1]
    g = refs[-3][...]
    beta = refs[-2][...]
    x = refs[0][...]
    for i in range(1, n_sum):
        x = x + refs[i][...]
    mu = jnp.mean(x, axis=-1, keepdims=True)
    var = jnp.mean(jnp.square(x - mu), axis=-1, keepdims=True)
    y = (x - mu) * lax.rsqrt(var + 1e-5) * g + beta
    if has_post:
        y = y + refs[n_sum][...]
    out_ref[...] = y


def layernorm(x, g, b, add=None, post_add=None):
    """y = LayerNorm(x [+ add]) [+ post_add], fused in one kernel."""
    shp = x.shape
    D = shp[-1]
    ins = [x.reshape(-1, D)]
    if add is not None:
        ins.append(add.reshape(-1, D))
    n_sum = len(ins)
    has_post = post_add is not None
    if has_post:
        ins.append(post_add.reshape(-1, D))
    M = ins[0].shape[0]
    tm, Mp = _choose_tile(M, 8)
    if Mp != M:
        ins = [jnp.pad(a, ((0, Mp - M), (0, 0))) for a in ins]
    in_specs = [pl.BlockSpec((tm, D), lambda i: (i, 0)) for _ in ins]
    in_specs += [pl.BlockSpec((1, D), lambda i: (0, 0)),
                 pl.BlockSpec((1, D), lambda i: (0, 0))]
    y = pl.pallas_call(
        functools.partial(_ln_kernel, n_sum=n_sum, has_post=has_post),
        out_shape=jax.ShapeDtypeStruct((Mp, D), jnp.float32),
        grid=(Mp // tm,),
        in_specs=in_specs,
        out_specs=pl.BlockSpec((tm, D), lambda i: (i, 0)),
        compiler_params=pltpu.CompilerParams(dimension_semantics=("parallel",)),
    )(*ins, g.reshape(1, D), b.reshape(1, D))
    if Mp != M:
        y = y[:M]
    return y.reshape(shp)


# --------------------------------------------------------------------------
# Log-softmax (row-tiled; row tile scales with vocab so blocks stay small)
# --------------------------------------------------------------------------

def _log_softmax_kernel(x_ref, o_ref):
    x = x_ref[...]
    m = jnp.max(x, axis=-1, keepdims=True)
    lse = jnp.log(jnp.sum(jnp.exp(x - m), axis=-1, keepdims=True)) + m
    o_ref[...] = x - lse


def log_softmax_last(x):
    shp = x.shape
    V = shp[-1]
    x2 = x.reshape(-1, V)
    M = x2.shape[0]
    # Keep each (tm, V) f32 block around <=2 MiB so double-buffered in+out
    # blocks fit scoped VMEM on every generation (v7x is the smallest).
    rows_budget = max(8, ((2 * 1024 * 1024) // (4 * V)) // 8 * 8)
    tm = min(512, rows_budget, _round_up(M, 8))
    Mp = _round_up(M, tm)
    xp = jnp.pad(x2, ((0, Mp - M), (0, 0))) if Mp != M else x2
    y = pl.pallas_call(
        _log_softmax_kernel,
        out_shape=jax.ShapeDtypeStruct((Mp, V), jnp.float32),
        grid=(Mp // tm,),
        in_specs=[pl.BlockSpec((tm, V), lambda i: (i, 0))],
        out_specs=pl.BlockSpec((tm, V), lambda i: (i, 0)),
        compiler_params=pltpu.CompilerParams(dimension_semantics=("parallel",)),
    )(xp)
    if Mp != M:
        y = y[:M]
    return y.reshape(shp)


# --------------------------------------------------------------------------
# Attention: grid=(B,), head loop inside the kernel, mask built once per batch
# element from key lengths held in SMEM (scalar prefetch).  Context is written
# as one lane-dense (Tq, D) block; head-averaged probabilities (decoder) are
# accumulated in-kernel and written once per batch element.
# --------------------------------------------------------------------------

def _attn_kernel(kvlen_ref, *refs, scale, causal, need_probs, H, dh, sep_kv):
    D = H * dh
    if sep_kv:
        q_all = refs[0][...]                      # (Tq, D)
        kv = refs[1][...]                         # (Tk, 2D)
        k_all, v_all = kv[:, :D], kv[:, D:]
        out_refs = refs[2:]
    else:
        qkv = refs[0][...]                        # (Tq, 3D)
        q_all, k_all, v_all = qkv[:, :D], qkv[:, D:2 * D], qkv[:, 2 * D:]
        out_refs = refs[1:]
    o_ref = out_refs[0]

    b = pl.program_id(0)
    Tq = q_all.shape[0]
    Tk = k_all.shape[0]
    kv_len = kvlen_ref[b]

    # Key-padding (+ causal) mask: built once per batch element.
    col = lax.broadcasted_iota(jnp.int32, (Tq, Tk), 1)
    mask = col >= kv_len
    if causal:
        row = lax.broadcasted_iota(jnp.int32, (Tq, Tk), 0)
        mask = jnp.logical_or(mask, col > row)

    ctx_parts = []
    p_sum = jnp.zeros((Tq, Tk), jnp.float32) if need_probs else None
    for h in range(H):
        lo, hi = h * dh, (h + 1) * dh
        q = q_all[:, lo:hi]
        k = k_all[:, lo:hi]
        v = v_all[:, lo:hi]
        s = lax.dot_general(q, k, (((1,), (1,)), ((), ())),
                            preferred_element_type=jnp.float32) * scale
        s = jnp.where(mask, -1e30, s)
        m = jnp.max(s, axis=-1, keepdims=True)
        e = jnp.exp(s - m)
        p = e * pl.reciprocal(jnp.sum(e, axis=-1, keepdims=True), approx=True)
        ctx_parts.append(jnp.dot(p, v, preferred_element_type=jnp.float32))
        if need_probs:
            p_sum = p_sum + p
    o_ref[...] = jnp.concatenate(ctx_parts, axis=-1)   # single lane-dense store
    if need_probs:
        out_refs[1][...] = p_sum * (1.0 / H)


def sdpa(q_in, kv_in, kv_len, *, num_heads, causal, need_probs):
    """Self-attn: q_in=(B,Tq,3D) fused QKV, kv_in=None.
       Cross-attn: q_in=(B,Tq,D), kv_in=(B,Tk,2D) fused K+V."""
    sep_kv = kv_in is not None
    B, Tq, Wq = q_in.shape
    D = Wq if sep_kv else Wq // 3
    H = num_heads
    dh = D // H
    Tk = kv_in.shape[1] if sep_kv else Tq

    in_arrays = [q_in]
    in_specs = [pl.BlockSpec((None, Tq, Wq), lambda b, kl: (b, 0, 0))]
    if sep_kv:
        in_arrays.append(kv_in)
        in_specs.append(pl.BlockSpec((None, Tk, 2 * D), lambda b, kl: (b, 0, 0)))

    o_shape = jax.ShapeDtypeStruct((B, Tq, D), jnp.float32)
    o_spec = pl.BlockSpec((None, Tq, D), lambda b, kl: (b, 0, 0))
    if need_probs:
        out_shape = (o_shape, jax.ShapeDtypeStruct((B, Tq, Tk), jnp.float32))
        out_specs = (o_spec, pl.BlockSpec((None, Tq, Tk), lambda b, kl: (b, 0, 0)))
    else:
        out_shape = o_shape
        out_specs = o_spec

    res = pl.pallas_call(
        functools.partial(_attn_kernel, scale=1.0 / math.sqrt(dh), causal=causal,
                          need_probs=need_probs, H=H, dh=dh, sep_kv=sep_kv),
        out_shape=out_shape,
        grid_spec=pltpu.PrefetchScalarGridSpec(
            num_scalar_prefetch=1, grid=(B,),
            in_specs=in_specs, out_specs=out_specs),
        compiler_params=pltpu.CompilerParams(dimension_semantics=("parallel",)),
    )(kv_len, *in_arrays)
    if need_probs:
        return res[0], res[1]
    return res, None


def multihead_attention(x_q, x_kv, p, num_heads, kv_len, *, causal=False,
                        need_probs=False):
    """torch.nn.MultiheadAttention (batch_first=True), eval mode.
    x_kv=None -> self-attention (fused QKV projection)."""
    if x_kv is None:
        qkv = linear3d(x_q, p["qkv"])                   # (B, Tq, 3D)
        ctx, probs = sdpa(qkv, None, kv_len, num_heads=num_heads,
                          causal=causal, need_probs=need_probs)
    else:
        q = linear3d(x_q, p["q"])                       # (B, Tq, D)
        kv = linear3d(x_kv, p["kv"])                    # (B, Tk, 2D)
        ctx, probs = sdpa(q, kv, kv_len, num_heads=num_heads,
                          causal=causal, need_probs=need_probs)
    out = linear3d(ctx, p["out"])
    return out, probs


# --------------------------------------------------------------------------
# Conv2DSubsampling / SpeechEmbedding
# --------------------------------------------------------------------------

def _extract_patches(x, kh, kw, sh, sw):
    """im2col glue: x (B, C, H, W) -> ((B*oh*ow, C*kh*kw), oh, ow)."""
    B, C, H, W = x.shape
    oh = (H - kh) // sh + 1
    ow = (W - kw) // sw + 1
    cols = []
    for i in range(kh):
        for j in range(kw):
            cols.append(x[:, :, i:i + sh * oh:sh, j:j + sw * ow:sw])
    p = jnp.stack(cols, axis=2)                    # (B, C, kh*kw, oh, ow)
    p = p.transpose(0, 3, 4, 1, 2).reshape(B * oh * ow, C * kh * kw)
    return p, oh, ow


def conv2d_relu(x, lp, strides):
    """Conv2d(k=3, stride=strides) + ReLU via im2col + tiled Pallas matmul."""
    Cout = lp["n"]
    patches, oh, ow = _extract_patches(x, 3, 3, strides[0], strides[1])
    y = linear(patches, lp, act="relu")            # (B*oh*ow, Cout)
    B = x.shape[0]
    return y.reshape(B, oh, ow, Cout).transpose(0, 3, 1, 2)


def speech_embedding(p, x, x_len):
    """SpeechEmbedding with use_blstm=False (mode='full')."""
    h = x[:, None, :, :]                                        # (B, 1, T, F)
    h = conv2d_relu(h, p["conv1"], (2, 2))                      # stride (2,2)
    h = conv2d_relu(h, p["conv2"], (1, 1))                      # stride (1,1)
    B, C, t, f = h.shape
    h = h.transpose(0, 2, 1, 3).reshape(B, t, C * f)
    h = linear3d(h, p["out"])                                   # Conv2DSubsampling.out
    new_len = jnp.minimum(
        jnp.ceil(x_len.astype(jnp.float32) / 2.0).astype(jnp.int32), t)
    return h, new_len


# --------------------------------------------------------------------------
# Encoder / Decoder
# --------------------------------------------------------------------------

def make_pe(max_len, d_model):
    pos = np.arange(max_len)[:, None].astype(np.float32)
    div = np.exp(np.arange(0, d_model, 2).astype(np.float32) *
                 (-math.log(10000.0) / d_model))
    pe = np.zeros((max_len, d_model), np.float32)
    pe[:, 0::2] = np.sin(pos * div)
    pe[:, 1::2] = np.cos(pos * div)
    return jnp.asarray(pe)


def encoder_layer(p, x, residual, enc_len, H):
    # Matches the PyTorch EncoderLayer: residual base is the pre-normed tensor.
    xn = layernorm(x, p["pre_norm"]["g"], p["pre_norm"]["b"])
    attn_out, _ = multihead_attention(xn, None, p["attn"], H, enc_len,
                                      causal=False, need_probs=False)
    x1 = layernorm(xn, p["norm1"]["g"], p["norm1"]["b"], add=attn_out)
    f = linear3d(x1, p["ffn1"], act="gelu")
    f = linear3d(f, p["ffn2"])
    # Fused: LN(x1 + f) + outer residual  (Encoder.forward's x_new + x_residual)
    return layernorm(x1, p["norm2"]["g"], p["norm2"]["b"], add=f,
                     post_add=residual)


def encoder_forward(p, x, x_len, num_heads):
    B, T, D = x.shape
    x = x + p["pe"][None, :T, :]
    x_residual = x
    for lp in p["layers"]:
        x = encoder_layer(lp, x, x_residual, x_len, num_heads)
        x_residual = x
    x = layernorm(x, p["after_norm"]["g"], p["after_norm"]["b"])
    ctc = linear3d(x, p["ctc"])
    ctc = log_softmax_last(ctc).transpose(1, 0, 2)          # (T, B, V)
    return x, x_len, ctc


def decoder_layer(p, x, enc_out, tgt_len, enc_len, H):
    x = layernorm(x, p["pre_norm"]["g"], p["pre_norm"]["b"])
    a1, w1 = multihead_attention(x, None, p["mha1"], H, tgt_len,
                                 causal=True, need_probs=True)
    x = layernorm(x, p["ln1"]["g"], p["ln1"]["b"], add=a1)
    a2, w2 = multihead_attention(x, enc_out, p["mha2"], H, enc_len,
                                 causal=False, need_probs=True)
    x = layernorm(x, p["ln2"]["g"], p["ln2"]["b"], add=a2)
    f = linear3d(x, p["ffn1"], act="gelu")
    f = linear3d(f, p["ffn2"])
    x = layernorm(x, p["ln3"]["g"], p["ln3"]["b"], add=f)
    return x, w1, w2


def decoder_forward(p, tgt, tgt_len, enc_out, enc_len, num_heads):
    B, T = tgt.shape
    x = jnp.take(p["embedding"], tgt, axis=0)          # embedding lookup (glue)
    x = x + p["pe"][None, :T, :]
    att = {}
    for i, lp in enumerate(p["layers"]):
        x, w1, w2 = decoder_layer(lp, x, enc_out, tgt_len, enc_len, num_heads)
        att["layer{}_dec_self".format(i + 1)] = w1
        att["layer{}_dec_cross".format(i + 1)] = w2
    seq_out = linear3d(x, p["final"])
    return seq_out, att


def transformer_forward(params, padded_input, input_lengths,
                        padded_target, target_lengths,
                        enc_heads, dec_heads):
    """mode='full' forward of the PyTorch Transformer (eval mode)."""
    enc_in, enc_len = speech_embedding(params["embed"], padded_input, input_lengths)
    enc_out, enc_len, ctc_out = encoder_forward(params["encoder"], enc_in,
                                                enc_len, enc_heads)
    seq_out, att = decoder_forward(params["decoder"], padded_target,
                                   target_lengths, enc_out, enc_len, dec_heads)
    return seq_out, att, ctc_out


# --------------------------------------------------------------------------
# Deterministic parameter initialization (synthetic weights)
# --------------------------------------------------------------------------

class KeyGen:
    def __init__(self, key):
        self.key = key

    def __call__(self):
        self.key, sub = jax.random.split(self.key)
        return sub


def xavier_t(key, in_dim, out_dim):
    """Xavier-normal weight, returned already transposed to (in_dim, out_dim)."""
    std = math.sqrt(2.0 / (in_dim + out_dim))
    return jax.random.normal(key, (in_dim, out_dim), jnp.float32) * std


def kaiming_conv(key, shape):  # shape (Cout, Cin, kh, kw), fan_out mode
    cout, _, kh, kw = shape
    std = math.sqrt(2.0 / (cout * kh * kw))
    return jax.random.normal(key, shape, jnp.float32) * std


def init_ln(d):
    return {"g": jnp.ones((d,), jnp.float32), "b": jnp.zeros((d,), jnp.float32)}


def _zeros(n):
    return jnp.zeros((n,), jnp.float32)


def init_mha(kg, d, *, self_attn):
    if self_attn:
        return {"qkv": pack_linear(xavier_t(kg(), d, 3 * d), _zeros(3 * d)),
                "out": pack_linear(xavier_t(kg(), d, d), _zeros(d))}
    return {"q": pack_linear(xavier_t(kg(), d, d), _zeros(d)),
            "kv": pack_linear(xavier_t(kg(), d, 2 * d), _zeros(2 * d)),
            "out": pack_linear(xavier_t(kg(), d, d), _zeros(d))}


def init_enc_layer(kg, d, d_ff):
    return {"pre_norm": init_ln(d),
            "attn": init_mha(kg, d, self_attn=True),
            "ffn1": pack_linear(xavier_t(kg(), d, d_ff), _zeros(d_ff)),
            "ffn2": pack_linear(xavier_t(kg(), d_ff, d), _zeros(d)),
            "norm1": init_ln(d), "norm2": init_ln(d)}


def init_dec_layer(kg, d, d_ff):
    return {"pre_norm": init_ln(d),
            "mha1": init_mha(kg, d, self_attn=True), "ln1": init_ln(d),
            "mha2": init_mha(kg, d, self_attn=False), "ln2": init_ln(d),
            "ffn1": pack_linear(xavier_t(kg(), d, d_ff), _zeros(d_ff)),
            "ffn2": pack_linear(xavier_t(kg(), d_ff, d), _zeros(d)),
            "ln3": init_ln(d)}


def init_params(key, *, input_dim, d_model, d_ff, vocab,
                enc_layers, dec_layers, speech_max_len, trans_max_len, std=0.02):
    kg = KeyGen(key)
    f1 = (input_dim - 3) // 2 + 1
    f2 = (f1 - 3) // 1 + 1
    conv_out_dim = d_model * f2
    embed = {
        "conv1": pack_linear(
            kaiming_conv(kg(), (d_model, 1, 3, 3)).reshape(d_model, -1).T,
            _zeros(d_model)),
        "conv2": pack_linear(
            kaiming_conv(kg(), (d_model, d_model, 3, 3)).reshape(d_model, -1).T,
            _zeros(d_model)),
        "out": pack_linear(xavier_t(kg(), conv_out_dim, d_model), _zeros(d_model)),
    }
    enc_max_len = int(np.ceil(speech_max_len / 2))
    encoder = {"pe": make_pe(enc_max_len, d_model),
               "layers": [init_enc_layer(kg, d_model, d_ff) for _ in range(enc_layers)],
               "after_norm": init_ln(d_model),
               "ctc": pack_linear(xavier_t(kg(), d_model, vocab), _zeros(vocab))}
    decoder = {"embedding": jax.random.normal(kg(), (vocab, d_model), jnp.float32) * std,
               "pe": make_pe(trans_max_len, d_model),
               "layers": [init_dec_layer(kg, d_model, d_ff) for _ in range(dec_layers)],
               "final": pack_linear(xavier_t(kg(), d_model, vocab), _zeros(vocab))}
    return {"embed": embed, "encoder": encoder, "decoder": decoder}


# --------------------------------------------------------------------------
# Main
# --------------------------------------------------------------------------

if __name__ == "__main__":
    B = 2
    T_in, input_dim = 16, 16        # speech frames x features
    d_model, d_ff = 32, 64
    enc_layers, dec_layers = 2, 2
    enc_heads, dec_heads = 4, 4
    vocab = 20
    T_dec = 8
    speech_max_len, trans_max_len = 16, 16

    key = jax.random.PRNGKey(0)
    kp, k1, k2 = jax.random.split(key, 3)

    params = init_params(kp, input_dim=input_dim, d_model=d_model, d_ff=d_ff,
                         vocab=vocab, enc_layers=enc_layers, dec_layers=dec_layers,
                         speech_max_len=speech_max_len, trans_max_len=trans_max_len)

    padded_input = jax.random.normal(k1, (B, T_in, input_dim), jnp.float32)
    input_lengths = jnp.array([16, 12], jnp.int32)
    padded_target = jax.random.randint(k2, (B, T_dec), 0, vocab, dtype=jnp.int32)
    target_lengths = jnp.array([8, 6], jnp.int32)

    seq_out, att_weights, ctc_out = transformer_forward(
        params, padded_input, input_lengths, padded_target, target_lengths,
        enc_heads, dec_heads)

    jax.block_until_ready(seq_out)
    jax.block_until_ready(ctc_out)
    for v in att_weights.values():
        jax.block_until_ready(v)

    assert seq_out.shape == (B, T_dec, vocab)
    assert ctc_out.shape[1] == B and ctc_out.shape[2] == vocab  # (T_enc, B, V)
    assert att_weights["layer1_dec_self"].shape == (B, T_dec, T_dec)
    print("KERNEL_OK")
</pallas_src>

<mosaic_0001>
module attributes {stable_mosaic.version = 11 : i64} {
  func.func @_matmul_kernel(%arg0: i32, %arg1: i32, %arg2: i32, %arg3: memref<104x128xf32, #tpu.memory_space<vmem>>, %arg4: memref<128x128xbf16, #tpu.memory_space<vmem>>, %arg5: memref<1x128xf32, #tpu.memory_space<vmem>>, %arg6: memref<104x128xf32, #tpu.memory_space<vmem>>, %arg7: memref<104x128xf32, #tpu.memory_space<vmem>>) attributes {dimension_semantics = [#tpu.dimension_semantics<parallel>, #tpu.dimension_semantics<parallel>, #tpu.dimension_semantics<arbitrary>], iteration_bounds = array<i64: 1, 1, 1>, scalar_prefetch = 0 : i64, scratch_operands = 1 : i64, tpu.core_type = #tpu.core_type<tc>, window_params = [{transform_indices = @transform_0, window_bounds = array<i64: 104, 128>}, {transform_indices = @transform_1, window_bounds = array<i64: 128, 128>}, {transform_indices = @transform_2, window_bounds = array<i64: 1, 128>}, {transform_indices = @transform_3, window_bounds = array<i64: 104, 128>}]} {
    %c0_i32 = arith.constant 0 : i32
    %0 = arith.cmpi eq, %arg2, %c0_i32 : i32
    %1 = arith.extui %0 : i1 to i32
    %c0_i32_0 = arith.constant 0 : i32
    %2 = arith.cmpi ne, %1, %c0_i32_0 : i32
    scf.if %2 {
      %cst_10 = arith.constant 0.000000e+00 : f32
      %13 = vector.broadcast %cst_10 : f32 to vector<104x128xf32>
      %c0_11 = arith.constant 0 : index
      %c0_12 = arith.constant 0 : index
      %14 = vector.load %arg7[%c0_11, %c0_12] : memref<104x128xf32, #tpu.memory_space<vmem>>, vector<104x128xf32>
      tpu.vector_store %arg7[%c0_11, %c0_12], %13 {strides = array<i32>} : memref<104x128xf32, #tpu.memory_space<vmem>>, vector<104x128xf32>,
    } else {
    }
    %c0 = arith.constant 0 : index
    %c0_1 = arith.constant 0 : index
    %3 = vector.load %arg7[%c0, %c0_1] : memref<104x128xf32, #tpu.memory_space<vmem>>, vector<104x128xf32>
    %c0_2 = arith.constant 0 : index
    %c0_3 = arith.constant 0 : index
    %4 = vector.load %arg3[%c0_2, %c0_3] : memref<104x128xf32, #tpu.memory_space<vmem>>, vector<104x128xf32>
    %5 = arith.truncf %4 : vector<104x128xf32> to vector<104x128xbf16>
    %c0_4 = arith.constant 0 : index
    %c0_5 = arith.constant 0 : index
    %6 = vector.load %arg4[%c0_4, %c0_5] : memref<128x128xbf16, #tpu.memory_space<vmem>>, vector<128x128xbf16>
    %cst = arith.constant dense<0.000000e+00> : vector<104x128xf32>
    %7 = tpu.matmul %5, %6, %cst {dimension_numbers = #tpu.dot_dimension_numbers<[1], [0], [0], [1], [0, 0, 1, 1], [], []>} : vector<104x128xbf16>, vector<128x128xbf16>, vector<104x128xf32> -> vector<104x128xf32>
    %8 = arith.addf %3, %7 : vector<104x128xf32>
    %c0_6 = arith.constant 0 : index
    %c0_7 = arith.constant 0 : index
    %9 = vector.load %arg7[%c0_6, %c0_7] : memref<104x128xf32, #tpu.memory_space<vmem>>, vector<104x128xf32>
    tpu.vector_store %arg7[%c0_6, %c0_7], %8 {strides = array<i32>} : memref<104x128xf32, #tpu.memory_space<vmem>>, vector<104x128xf32>,
    %c0_i32_8 = arith.constant 0 : i32
    %10 = arith.cmpi eq, %arg2, %c0_i32_8 : i32
    %11 = arith.extui %10 : i1 to i32
    %c0_i32_9 = arith.constant 0 : i32
    %12 = arith.cmpi ne, %11, %c0_i32_9 : i32
    scf.if %12 {
      %c0_10 = arith.constant 0 : index
      %c0_11 = arith.constant 0 : index
      %13 = vector.load %arg7[%c0_10, %c0_11] : memref<104x128xf32, #tpu.memory_space<vmem>>, vector<104x128xf32>
      %c0_12 = arith.constant 0 : index
      %c0_13 = arith.constant 0 : index
      %14 = vector.load %arg5[%c0_12, %c0_13] : memref<1x128xf32, #tpu.memory_space<vmem>>, vector<1x128xf32>
      %15 = vector.broadcast %14 : vector<1x128xf32> to vector<104x128xf32>
      %16 = arith.addf %13, %15 : vector<104x128xf32>
      %cst_14 = arith.constant 0.000000e+00 : f32
      %17 = vector.broadcast %cst_14 : f32 to vector<104x128xf32>
      %18 = arith.maximumf %16, %17 : vector<104x128xf32>
      %c0_15 = arith.constant 0 : index
      %c0_16 = arith.constant 0 : index
      %19 = vector.load %arg6[%c0_15, %c0_16] : memref<104x128xf32, #tpu.memory_space<vmem>>, vector<104x128xf32>
      tpu.vector_store %arg6[%c0_15, %c0_16], %18 {strides = array<i32>} : memref<104x128xf32, #tpu.memory_space<vmem>>, vector<104x128xf32>,
    } else {
    }
    return
  }
  func.func @transform_0(%arg0: i32, %arg1: i32, %arg2: i32) -> (i32, i32) {
    %c0_i32 = arith.constant 0 : i32
    return %arg0, %arg2 : i32, i32
  }
  func.func @transform_1(%arg0: i32, %arg1: i32, %arg2: i32) -> (i32, i32) {
    %c0_i32 = arith.constant 0 : i32
    return %arg2, %arg1 : i32, i32
  }
  func.func @transform_2(%arg0: i32, %arg1: i32, %arg2: i32) -> (i32, i32) {
    %c0_i32 = arith.constant 0 : i32
    %c0_i32_0 = arith.constant 0 : i32
    return %c0_i32, %arg1 : i32, i32
  }
  func.func @transform_3(%arg0: i32, %arg1: i32, %arg2: i32) -> (i32, i32) {
    %c0_i32 = arith.constant 0 : i32
    return %arg0, %arg1 : i32, i32
  }
}

</mosaic_0001>

<bundles_post_ra>
// kernel: tpu_custom_call.1
= control target key start
LH: loop header
LB: loop body
LE: loop exit
PB: predicated region body
PF: predicated region fallthrough
CT: control target
= control target key end

     0   :  { %8 = vsyncpa [#allocation4], 0  ;;  %s644_s0 = inlined_call_operand.hbm [shape: f32[104,128], index: 0, kind: input, shape index: {}]   ;;  %s645_s1 = inlined_call_operand.hbm [shape: bf16[128,128], index: 1, kind: input, shape index: {}]   ;;  %s646_s2 = inlined_call_operand.vmem [shape: f32[1,128], index: 2, kind: input, shape index: {}]   ;;  %s647_s3 = inlined_call_operand.hbm [shape: f32[104,128], index: 3, kind: output, shape index: {}]  }
   0x1   :  { %9 = vsyncpa [#allocation7], 0 }
   0x2   :  { %10 = vsyncpa [#allocation5], 0  ;;  %s525_s12 = smov [#allocation3]   ;;  %s453_s16 = scalar_lea.hbm %s644_s0, 1664 }
   0x3   :  { %s16_s13 = sshll.u32 %s525_s12, 4  ;;  %p454_p0 = scmp.ne.s32.totalorder %s644_s0, %s453_s16  ;;  %s17_s13 = int_to_ptr.vmem [resolvable:$true] %s16_s13 }
   0x4   :  { %p457_p1 = scmp.lt.u32.totalorder %s453_s16, %s644_s0 }
   0x6   :  { %p459_p2 = pnand %p457_p1, %p454_p0 }
   0x8   :  { %462 = shalt.err (!%p459_p2)
}
   0x9   :  { %s463_s21 = scalar_lea.vmem %s17_s13, 1664  ;;  %p468_p4 = scmp.lt.s32.totalorder %s17_s13, %s17_s13 }
   0xa   :  { %p464_p3 = scmp.ne.s32.totalorder %s17_s13, %s463_s21  ;;  %p469_p5 = scmp.lt.s32.totalorder %s463_s21, %s463_s21 }
   0xc   :  { %p470_p6 = por %p469_p5, %p468_p4 }
   0xe   :  { %p471_p7 = pnand %p470_p6, %p464_p3 }
  0x10   :  { %474 = shalt.err (!%p471_p7)
}
  0x11   :  { %s526_s22 = smov 128   ;;  %s527_s23 = smov 8  }
  0x12   :  { %22 = dma.hbm_to_vmem [thread:$0]  %s644_s0, 1664, %s17_s13, [#allocation4], %s526_s22, %s526_s22, %s527_s23  }
  0x13   :  { %s528_s26 = smov [#allocation6]   ;;  %s475_s30 = scalar_lea.hbm %s645_s1, 1024 }
  0x14   :  { %s28_s27 = sshll.u32 %s528_s26, 4  ;;  %p476_p8 = scmp.ne.s32.totalorder %s645_s1, %s475_s30  ;;  %s29_s27 = int_to_ptr.vmem [resolvable:$true] %s28_s27 }
  0x15   :  { %p479_p9 = scmp.lt.u32.totalorder %s475_s30, %s645_s1 }
  0x17   :  { %p481_p10 = pnand %p479_p9, %p476_p8 }
  0x19   :  { %484 = shalt.err (!%p481_p10)
}
  0x1a   :  { %s485_s8 = scalar_lea.vmem %s29_s27, 1024  ;;  %p490_p12 = scmp.lt.s32.totalorder %s29_s27, %s29_s27 }
  0x1b   :  { %p486_p11 = scmp.ne.s32.totalorder %s29_s27, %s485_s8  ;;  %p491_p13 = scmp.lt.s32.totalorder %s485_s8, %s485_s8 }
  0x1d   :  { %p492_p0 = por %p491_p13, %p490_p12 }
  0x1f   :  { %p493_p1 = pnand %p492_p0, %p486_p11 }
  0x21   :  { %496 = shalt.err (!%p493_p1)
}
  0x22   :  { %s529_s0 = smov 64   ;;  %s530_s9 = smov 4  }
  0x23   :  { %34 = dma.hbm_to_vmem [thread:$0]  %s645_s1, 1024, %s29_s27, [#allocation7], %s529_s0, %s529_s0, %s530_s9  }
  0x24   :  { %519 = dma.done.wait [#allocation4], 1664  }
  0x25   :  { %520 = vsyncadd [#allocation4], 4294965632 }
  0x26   :  { %521 = dma.done.wait [#allocation7], 1024  }
  0x27   :  { %522 = vsyncadd [#allocation7], 4294966272  ;;  %v531_v0 = vmov 0.0   ;;  %vm532_vm0 = vmmov 0   ;;  %v445_v1 = vld [vmem:[#allocation6] sm:$0xff]   ;;  %v446_v2 = vld [vmem:[#allocation6 + $0x8] sm:$0xff]  }
  0x28   :  { %376 = vmatprep.subr.bf16.mxu0 %v531_v0  ;;  %420 = vmatprep.subr.bf16.mxu1 %v531_v0  ;;  %v447_v3 = vld [vmem:[#allocation6 + $0x10] sm:$0xff]   ;;  %v448_v4 = vld [vmem:[#allocation6 + $0x18] sm:$0xff]   ;;  %v449_v5 = vld [vmem:[#allocation6 + $0x20] sm:$0xff]  }
  0x29   :  { %392 = vmatprep.mubr.msk.bf16.mxu0 %vm532_vm0, %v531_v0  ;;  %408 = vmatprep.mubr.msk.bf16.mxu1 %vm532_vm0, %v531_v0  ;;  %v450_v6 = vld [vmem:[#allocation6 + $0x28] sm:$0xff]   ;;  %v451_v7 = vld [vmem:[#allocation6 + $0x30] sm:$0xff]   ;;  %v452_v8 = vld [vmem:[#allocation6 + $0x38] sm:$0xff]  }
  0x2a   :  { %377 = vmatpush3.bf16.msra.mxu0 %v445_v1  ;;  %428 = vmatpush3.bf16.msra.mxu1 %v445_v1  ;;  %v74_v9 = vld [vmem:[#allocation3] sm:$0xff]  ;;  %v75_v10 = vld [vmem:[#allocation3 + $0x8] sm:$0xff]  ;;  %v76_v15 = vld [vmem:[#allocation3 + $0x10] sm:$0xff] }
  0x2b   :  { %378 = vmatprep.subr.bf16.mxu0 %v531_v0  ;;  %421 = vmatprep.subr.bf16.mxu1 %v531_v0  ;;  %v82_v11 = vld [vmem:[#allocation3 + $0x40] sm:$0xff]  ;;  %v83_v12 = vld [vmem:[#allocation3 + $0x48] sm:$0xff]  ;;  %v87_v13 = vpack.c.bf16 %v75_v10, %v74_v9  ;;  %v77_v16 = vld [vmem:[#allocation3 + $0x18] sm:$0xff] }
  0x2c   :  { %v91_v14 = vpack.c.bf16 %v83_v12, %v82_v11  ;;  %v84_v17 = vld [vmem:[#allocation3 + $0x50] sm:$0xff]  ;;  %v85_v18 = vld [vmem:[#allocation3 + $0x58] sm:$0xff]  ;;  %v88_v19 = vpack.c.bf16 %v77_v16, %v76_v15  ;;  %v78_v21 = vld [vmem:[#allocation3 + $0x20] sm:$0xff] }
  0x2d   :  { %v92_v20 = vpack.c.bf16 %v85_v18, %v84_v17  ;;  %v79_v22 = vld [vmem:[#allocation3 + $0x28] sm:$0xff]  ;;  %v86_v23 = vld [vmem:[#allocation3 + $0x60] sm:$0xff]  ;;  %v80_v26 = vld [vmem:[#allocation3 + $0x30] sm:$0xff] }
  0x2e   :  { %379 = vmatpush3.bf16.msra.mxu0 %v446_v2  ;;  %429 = vmatpush3.bf16.msra.mxu1 %v446_v2  ;;  %v89_v24 = vpack.c.bf16 %v79_v22, %v78_v21  ;;  %v93_v25 = vpack.c.bf16 %v86_v23, %v86_v23  ;;  %v81_v27 = vld [vmem:[#allocation3 + $0x38] sm:$0xff]  ;;  %v614_v29 = vld [vmem:[%s646_s2] ss:$0 sm:$0xff]  ;;  %s533_s2 = smov [#allocation8]  }
  0x2f   :  { %380 = vmatprep.subr.bf16.mxu0 %v531_v0  ;;  %422 = vmatprep.subr.bf16.mxu1 %v531_v0  ;;  %v90_v28 = vpack.c.bf16 %v81_v27, %v80_v26  ;;  %s339_s13 = sshll.u32 %s533_s2, 4  ;;  %s340_s13 = int_to_ptr.vmem [resolvable:$true] %s339_s13 }
  0x30   :  { %s497_s14 = scalar_lea.vmem %s340_s13, 1664  ;;  %p502_p3 = scmp.lt.s32.totalorder %s340_s13, %s340_s13 }
  0x31   :  { %p498_p2 = scmp.ne.s32.totalorder %s340_s13, %s497_s14  ;;  %p503_p4 = scmp.lt.s32.totalorder %s497_s14, %s497_s14 }
  0x32   :  { %381 = vmatpush3.bf16.msra.mxu0 %v447_v3  ;;  %430 = vmatpush3.bf16.msra.mxu1 %v447_v3 }
  0x33   :  { %382 = vmatprep.subr.bf16.mxu0 %v531_v0  ;;  %423 = vmatprep.subr.bf16.mxu1 %v531_v0  ;;  %p504_p5 = por %p503_p4, %p502_p3 }
  0x35   :  { %p505_p6 = pnand %p504_p5, %p498_p2 }
  0x36   :  { %383 = vmatpush3.bf16.msra.mxu0 %v448_v4  ;;  %431 = vmatpush3.bf16.msra.mxu1 %v448_v4 }
  0x37   :  { %384 = vmatprep.subr.bf16.mxu0 %v531_v0  ;;  %424 = vmatprep.subr.bf16.mxu1 %v531_v0 }
  0x3a   :  { %385 = vmatpush3.bf16.msra.mxu0 %v449_v5  ;;  %432 = vmatpush3.bf16.msra.mxu1 %v449_v5 }
  0x3b   :  { %386 = vmatprep.subr.bf16.mxu0 %v531_v0  ;;  %425 = vmatprep.subr.bf16.mxu1 %v531_v0 }
  0x3e   :  { %387 = vmatpush3.bf16.msra.mxu0 %v450_v6  ;;  %433 = vmatpush3.bf16.msra.mxu1 %v450_v6 }
  0x3f   :  { %388 = vmatprep.subr.bf16.mxu0 %v531_v0  ;;  %426 = vmatprep.subr.bf16.mxu1 %v531_v0 }
  0x42   :  { %389 = vmatpush3.bf16.msra.mxu0 %v451_v7  ;;  %434 = vmatpush3.bf16.msra.mxu1 %v451_v7 }
  0x43   :  { %390 = vmatprep.subr.bf16.mxu0 %v531_v0  ;;  %427 = vmatprep.subr.bf16.mxu1 %v531_v0 }
  0x46   :  { %391 = vmatpush3.bf16.msra.mxu0 %v452_v8  ;;  %435 = vmatpush3.bf16.msra.mxu1 %v452_v8 }
  0x49   :  { %393 = vmatmul.mubr.bf16.vlgmr.msra.gmra.mrb[0].mxu0 %v87_v13  ;;  %409 = vmatmul.mubr.bf16.vlgmr.msra.gmra.mrb[0].mxu1 %v91_v14 }
  0x4a   :  { %396 = vmatprep.mubr.msk.bf16.mxu0 %vm532_vm0, %v531_v0  ;;  %412 = vmatprep.mubr.msk.bf16.mxu1 %vm532_vm0, %v531_v0 }
  0x51   :  { %397 = vmatmul.mubr.bf16.gmra.mrb[4].mxu0 %v88_v19  ;;  %413 = vmatmul.mubr.bf16.gmra.mrb[4].mxu1 %v92_v20 }
  0x52   :  { %400 = vmatprep.mubr.msk.bf16.mxu0 %vm532_vm0, %v531_v0  ;;  %416 = vmatprep.mubr.msk.bf16.mxu1 %vm532_vm0, %v531_v0 }
  0x59   :  { %401 = vmatmul.mubr.bf16.gmra.mrb[8].mxu0 %v89_v24  ;;  %417 = vmatmul.mubr.bf16.gmra.mrb[8].mxu1 %v93_v25 }
  0x5a   :  { %404 = vmatprep.mubr.msk.bf16.mxu0 %vm532_vm0, %v531_v0 }
  0x61   :  { %405 = vmatmul.mubr.bf16.gmra.mrb[12].mxu0 %v90_v28 }
 0x11c   :  { %v192_v30 = vpop.f32.mrb[0].mxu0  ;;  %v224_v31 = vpop.f32.mrb[0].mxu1 }
 0x11d   :  { %v295_v32 = vadd.f32 %v614_v29, %v192_v30  ;;  %v394_v33 = vpop.f32.mrb[1].mxu0  ;;  %v303_v34 = vadd.f32 %v614_v29, %v224_v31  ;;  %v410_v35 = vpop.f32.mrb[1].mxu1 }
 0x11e   :  { %v195_v36 = vpop.f32.mrb[2].mxu0  ;;  %v227_v37 = vpop.f32.mrb[2].mxu1 }
 0x11f   :  { %v308_v38 = vmax.f32 %v295_v32, 0.0  ;;  %v296_v39 = vadd.f32 %v614_v29, %v195_v36  ;;  %v395_v40 = vpop.f32.mrb[3].mxu0  ;;  %v316_v41 = vmax.f32 %v303_v34, 0.0  ;;  %v304_v42 = vadd.f32 %v614_v29, %v227_v37  ;;  %v411_v43 = vpop.f32.mrb[3].mxu1 }
 0x121   :  { %321 = vst [vmem:[#allocation8] sm:$0xff] %v308_v38  ;;  %v309_v44 = vmax.f32 %v296_v39, 0.0  ;;  %329 = vst [vmem:[#allocation8 + $0x40] sm:$0xff] %v316_v41  ;;  %v317_v45 = vmax.f32 %v304_v42, 0.0 }
 0x123   :  { %322 = vst [vmem:[#allocation8 + $0x8] sm:$0xff] %v309_v44  ;;  %330 = vst [vmem:[#allocation8 + $0x48] sm:$0xff] %v317_v45 }
 0x124   :  { %v200_v46 = vpop.f32.mrb[4].mxu0  ;;  %v232_v47 = vpop.f32.mrb[4].mxu1 }
 0x125   :  { %v297_v48 = vadd.f32 %v614_v29, %v200_v46  ;;  %v398_v49 = vpop.f32.mrb[5].mxu0  ;;  %v305_v50 = vadd.f32 %v614_v29, %v232_v47  ;;  %v414_v51 = vpop.f32.mrb[5].mxu1 }
 0x126   :  { %v203_v52 = vpop.f32.mrb[6].mxu0  ;;  %v235_v53 = vpop.f32.mrb[6].mxu1 }
 0x127   :  { %v310_v54 = vmax.f32 %v297_v48, 0.0  ;;  %v298_v55 = vadd.f32 %v614_v29, %v203_v52  ;;  %v399_v56 = vpop.f32.mrb[7].mxu0  ;;  %v318_v57 = vmax.f32 %v305_v50, 0.0  ;;  %v306_v58 = vadd.f32 %v614_v29, %v235_v53  ;;  %v415_v59 = vpop.f32.mrb[7].mxu1 }
 0x129   :  { %323 = vst [vmem:[#allocation8 + $0x10] sm:$0xff] %v310_v54  ;;  %v311_v60 = vmax.f32 %v298_v55, 0.0  ;;  %331 = vst [vmem:[#allocation8 + $0x50] sm:$0xff] %v318_v57  ;;  %v319_v61 = vmax.f32 %v306_v58, 0.0 }
 0x12b   :  { %324 = vst [vmem:[#allocation8 + $0x18] sm:$0xff] %v311_v60  ;;  %332 = vst [vmem:[#allocation8 + $0x58] sm:$0xff] %v319_v61 }
 0x12c   :  { %v208_v62 = vpop.f32.mrb[8].mxu0  ;;  %v240_v63 = vpop.f32.mrb[8].mxu1 }
 0x12d   :  { %v299_v0 = vadd.f32 %v614_v29, %v208_v62  ;;  %v402_v1 = vpop.f32.mrb[9].mxu0  ;;  %v307_v2 = vadd.f32 %v614_v29, %v240_v63  ;;  %v418_v3 = vpop.f32.mrb[9].mxu1 }
 0x12e   :  { %v211_v4 = vpop.f32.mrb[10].mxu0  ;;  %v243_v5 = vpop.f32.mrb[10].mxu1 }
 0x12f   :  { %v312_v6 = vmax.f32 %v299_v0, 0.0  ;;  %v300_v7 = vadd.f32 %v614_v29, %v211_v4  ;;  %v403_v8 = vpop.f32.mrb[11].mxu0  ;;  %v320_v9 = vmax.f32 %v307_v2, 0.0  ;;  %v419_v10 = vpop.f32.mrb[11].mxu1 }
 0x131   :  { %325 = vst [vmem:[#allocation8 + $0x20] sm:$0xff] %v312_v6  ;;  %v313_v11 = vmax.f32 %v300_v7, 0.0  ;;  %333 = vst [vmem:[#allocation8 + $0x60] sm:$0xff] %v320_v9 }
 0x133   :  { %326 = vst [vmem:[#allocation8 + $0x28] sm:$0xff] %v313_v11 }
 0x134   :  { %v216_v12 = vpop.f32.mrb[12].mxu0 }
 0x135   :  { %v301_v13 = vadd.f32 %v614_v29, %v216_v12  ;;  %v406_v14 = vpop.f32.mrb[13].mxu0 }
 0x136   :  { %v219_v15 = vpop.f32.mrb[14].mxu0 }
 0x137   :  { %v314_v16 = vmax.f32 %v301_v13, 0.0  ;;  %v302_v17 = vadd.f32 %v614_v29, %v219_v15  ;;  %v407_v18 = vpop.f32.mrb[15].mxu0 }
 0x139   :  { %327 = vst [vmem:[#allocation8 + $0x30] sm:$0xff] %v314_v16  ;;  %v315_v19 = vmax.f32 %v302_v17, 0.0 }
 0x13b   :  { %328 = vst [vmem:[#allocation8 + $0x38] sm:$0xff] %v315_v19 }
 0x13c   :  { %508 = shalt.err (!%p505_p6)
}
 0x13d   :  { %s509_s17 = scalar_lea.hbm %s647_s3, 1664 }
 0x13e   :  { %p510_p7 = scmp.ne.s32.totalorder %s647_s3, %s509_s17  ;;  %p513_p8 = scmp.lt.u32.totalorder %s509_s17, %s647_s3 }
 0x140   :  { %p515_p9 = pnand %p513_p8, %p510_p7 }
 0x142   :  { %518 = shalt.err (!%p515_p9)
}
 0x143   :  { %345 = dma.vmem_to_hbm [thread:$0]  %s340_s13, 1664, %s647_s3, [#allocation5], %s526_s22, %s526_s22, %s527_s23  }
 0x144   :  { %523 = dma.done.wait [#allocation5], 1664  }
 0x145   :  { %524 = vsyncadd [#allocation5], 4294965632 }
 0x146   :  { %349 = vsyncpa [#allocation4], 1 }
 0x147   :  { %350 = vsyncpa [#allocation7], 1 }
 0x148   :  { %351 = vsyncpa [#allocation5], 1 }

</bundles_post_ra>
